<compile_context>
chip_gen: v7x
topology: tpu7x:2x2x1
jax: 0.10.0
libtpu: 0.0.40
codegen_flags: <defaults>
</compile_context>

<pallas_src>
import math

import numpy as np
import jax
import jax.numpy as jnp
from jax import lax
from jax.experimental import pallas as pl
from jax.experimental.pallas import tpu as pltpu

IN_DIM = 3          # query point dimension (xyz)
PAD_IN = 8          # sublane-padded input dim for an aligned MXU layer-0 dot
HIDDEN = 32         # hidden_dim
NUM_LAYERS = 2      # number of intermediate FCLayer(hidden, hidden) blocks
CHUNK = 512         # lanes per inner chunk (bounds vreg live range)
MAX_TILE_N = 8192   # lanes per grid step (amortizes per-step overhead)
LN_EPS = 1e-5       # nn.LayerNorm default eps


def _round_up(a, b):
    return ((a + b - 1) // b) * b


def _ln_relu_cols(h):
    """LayerNorm (gamma=1, beta=0) over the feature axis (axis 0) + ReLU.

    h: (HIDDEN, chunk) — features on sublanes, points on lanes.
    Single subtract reused for variance and normalize; rsqrt runs on the EUP.
    """
    mean = jnp.mean(h, axis=0, keepdims=True)
    hc = h - mean
    var = jnp.mean(hc * hc, axis=0, keepdims=True)
    return jnp.maximum(hc * lax.rsqrt(var + LN_EPS), 0.0)


def _make_kernel(chunk, num_chunks):
    """Build the kernel for a given (chunk, num_chunks) configuration."""

    def kernel(x_ref, w0_ref, b0_ref, ws_ref, bs_ref, wo_ref, bo_ref, o_ref):
        # x_ref : (PAD_IN, tile)            points on lanes, K zero-padded to 8
        # w0_ref: (HIDDEN, PAD_IN)          PyTorch (out, in), zero-padded cols
        # b0_ref: (HIDDEN, 1)
        # ws_ref: (NUM_LAYERS, HIDDEN, HIDDEN)
        # bs_ref: (NUM_LAYERS, HIDDEN, 1)
        # wo_ref: (1, HIDDEN)               PyTorch layout of Linear(hidden,1)
        # bo_ref: (1,) scalar in SMEM
        # o_ref : (1, tile)                 lane-dense output
        w0 = w0_ref[...]
        b0 = b0_ref[...]
        ws = ws_ref[...]
        bs = bs_ref[...]
        wo = wo_ref[...]
        bo = bo_ref[0]

        def chunk_body(c, carry):
            off = pl.multiple_of(c * chunk, chunk)
            xc = x_ref[:, pl.ds(off, chunk)]                      # (8, chunk)

            # FCLayer 0: (32, 8) @ (8, chunk) on the MXU.
            h = jnp.dot(w0, xc, preferred_element_type=jnp.float32) + b0
            h = _ln_relu_cols(h)

            # Hidden FCLayers: (32, 32) @ (32, chunk) on the MXU.
            for l in range(NUM_LAYERS):
                h = jnp.dot(ws[l], h, preferred_element_type=jnp.float32) + bs[l]
                h = _ln_relu_cols(h)

            # Outmost Linear(hidden, 1): (1, 32) @ (32, chunk) on the MXU,
            # then sigmoid via EUP exp + approximate reciprocal.
            z = jnp.dot(wo, h, preferred_element_type=jnp.float32) + bo
            o_ref[:, pl.ds(off, chunk)] = pl.reciprocal(
                1.0 + jnp.exp(-z), approx=True)
            return carry

        lax.fori_loop(0, num_chunks, chunk_body, 0, unroll=True)

    return kernel


@jax.jit
def occupancy_field(x, params):
    """x: (..., IN_DIM) float32 -> (...) float32 occupancy in [0, 1]."""
    w0p, b0, ws, bs, wo, bo = params
    lead = x.shape[:-1]
    n = math.prod(lead)
    x2 = x.reshape(n, IN_DIM).astype(jnp.float32)

    # Tile / chunk selection: chunk bounds vreg pressure, tile amortizes the
    # per-grid-step overhead, and mid/large N keeps >= 2 grid steps so the
    # single "parallel" axis can shard across v7x's two TensorCores.
    if n <= CHUNK:
        chunk = max(128, _round_up(n, 128))
        tile = chunk
    else:
        chunk = CHUNK
        tile = min(MAX_TILE_N, _round_up(pl.cdiv(n, 2), chunk))
    num_chunks = tile // chunk
    grid_n = pl.cdiv(n, tile)
    n_pad = grid_n * tile

    # Points-on-lanes layout: (PAD_IN, n_pad) slab with K zero-padded to 8
    # sublanes (aligned MXU operand) and N padded so every block is fully in
    # bounds.  Done under jit so XLA fuses the transpose+pad into one pass.
    # TODO(synk): have the upstream producer emit x already as (8, N) to drop
    # this layout pass entirely.
    xt = jnp.zeros((PAD_IN, n_pad), jnp.float32).at[:IN_DIM, :n].set(x2.T)

    out = pl.pallas_call(
        _make_kernel(chunk, num_chunks),
        out_shape=jax.ShapeDtypeStruct((1, n_pad), jnp.float32),
        grid=(grid_n,),
        in_specs=[
            pl.BlockSpec((PAD_IN, tile), lambda i: (0, i)),                 # x tile
            pl.BlockSpec((HIDDEN, PAD_IN), lambda i: (0, 0)),               # W0 (out,in)
            pl.BlockSpec((HIDDEN, 1), lambda i: (0, 0)),                    # b0 column
            pl.BlockSpec((NUM_LAYERS, HIDDEN, HIDDEN),
                         lambda i: (0, 0, 0)),                              # hidden W (out,in)
            pl.BlockSpec((NUM_LAYERS, HIDDEN, 1),
                         lambda i: (0, 0, 0)),                              # hidden b columns
            pl.BlockSpec((1, HIDDEN), lambda i: (0, 0)),                    # W_out row
            pl.BlockSpec(memory_space=pltpu.MemorySpace.SMEM),              # b_out scalar
        ],
        out_specs=pl.BlockSpec((1, tile), lambda i: (0, i)),                # lane-dense out
        compiler_params=pltpu.CompilerParams(
            dimension_semantics=("parallel",)),
    )(xt, w0p, b0, ws, bs, wo, bo)

    return out[0, :n].reshape(lead)


def occupancy_ref(x, params):
    """Pure-JAX reference (same math as the PyTorch module)."""
    w0p, b0, ws, bs, wo, bo = params

    def ln_relu(h):
        mean = jnp.mean(h, axis=-1, keepdims=True)
        var = jnp.mean(jnp.square(h - mean), axis=-1, keepdims=True)
        return jnp.maximum((h - mean) * lax.rsqrt(var + LN_EPS), 0.0)

    lead = x.shape[:-1]
    xf = x.reshape(-1, IN_DIM).astype(jnp.float32)
    h = ln_relu(xf @ w0p[:, :IN_DIM].T + b0[:, 0])
    for l in range(NUM_LAYERS):
        h = ln_relu(h @ ws[l].T + bs[l, :, 0])
    logits = h @ wo[0] + bo[0]
    return jax.nn.sigmoid(logits).reshape(lead)


def init_params(key):
    """Deterministic synthetic init mirroring kaiming_normal_(fan_in, relu)
    for weights and PyTorch's default uniform bias init.  Weights stay in
    PyTorch (out, in) layout; W0 is zero-padded to PAD_IN input columns;
    biases are (out, 1) columns."""
    ks = jax.random.split(key, 2 * (NUM_LAYERS + 2))

    def kaiming(k, fan_in, fan_out):
        std = math.sqrt(2.0 / fan_in)
        return std * jax.random.normal(k, (fan_out, fan_in), jnp.float32)

    def bias(k, fan_in, fan_out):
        bound = 1.0 / math.sqrt(fan_in)
        return jax.random.uniform(k, (fan_out, 1), jnp.float32, -bound, bound)

    w0 = kaiming(ks[0], IN_DIM, HIDDEN)
    w0p = jnp.pad(w0, ((0, 0), (0, PAD_IN - IN_DIM)))            # (HIDDEN, 8)
    b0 = bias(ks[1], IN_DIM, HIDDEN)                             # (HIDDEN, 1)
    ws = jnp.stack([kaiming(ks[2 + 2 * l], HIDDEN, HIDDEN)
                    for l in range(NUM_LAYERS)], axis=0)         # (L, H, H)
    bs = jnp.stack([bias(ks[3 + 2 * l], HIDDEN, HIDDEN)
                    for l in range(NUM_LAYERS)], axis=0)         # (L, H, 1)
    wo = kaiming(ks[2 + 2 * NUM_LAYERS], HIDDEN, 1)              # (1, HIDDEN)
    bo = bias(ks[3 + 2 * NUM_LAYERS], HIDDEN, 1)[:, 0]           # (1,)
    return (w0p, b0, ws, bs, wo, bo)


if __name__ == "__main__":
    key = jax.random.PRNGKey(0)
    kx, kx2, kp = jax.random.split(key, 3)
    params = init_params(kp)

    # (batch=2, samples=128, xyz=3) query points -> occupancy (2, 128)
    x = jax.random.normal(kx, (2, 128, IN_DIM), jnp.float32)
    out = jax.block_until_ready(occupancy_field(x, params))
    assert out.shape == (2, 128), out.shape
    ref = occupancy_ref(x, params)
    # Tolerance covers the EUP approximate-reciprocal sigmoid and MXU default
    # precision vs. the pure-XLA reference (output is in [0, 1]).
    np.testing.assert_allclose(np.asarray(out), np.asarray(ref),
                               rtol=2e-3, atol=1e-3)

    # Ragged N exercising multi-grid-step tiling + lane padding.
    x_r = jax.random.normal(kx2, (1, 1000, IN_DIM), jnp.float32)
    out_r = jax.block_until_ready(occupancy_field(x_r, params))
    assert out_r.shape == (1, 1000), out_r.shape
    ref_r = occupancy_ref(x_r, params)
    np.testing.assert_allclose(np.asarray(out_r), np.asarray(ref_r),
                               rtol=2e-3, atol=1e-3)

    print("KERNEL_OK")
</pallas_src>

<mosaic_0001>
module attributes {stable_mosaic.version = 11 : i64} {
  func.func @kernel(%arg0: i32, %arg1: memref<8x256xf32, #tpu.memory_space<vmem>>, %arg2: memref<32x8xf32, #tpu.memory_space<vmem>>, %arg3: memref<32x1xf32, #tpu.memory_space<vmem>>, %arg4: memref<2x32x32xf32, #tpu.memory_space<vmem>>, %arg5: memref<2x32x1xf32, #tpu.memory_space<vmem>>, %arg6: memref<1x32xf32, #tpu.memory_space<vmem>>, %arg7: memref<1xf32, #tpu.memory_space<smem>>, %arg8: memref<1x256xf32, #tpu.memory_space<vmem>>) attributes {dimension_semantics = [#tpu.dimension_semantics<parallel>], iteration_bounds = array<i64: 1>, scalar_prefetch = 0 : i64, scratch_operands = 0 : i64, tpu.core_type = #tpu.core_type<tc>, window_params = [{transform_indices = @transform_0, window_bounds = array<i64: 8, 256>}, {pipeline_mode = #tpu.pipeline_mode<synchronous>, transform_indices = @transform_1, window_bounds = array<i64: 32, 8>}, {pipeline_mode = #tpu.pipeline_mode<synchronous>, transform_indices = @transform_2, window_bounds = array<i64: 32, 1>}, {pipeline_mode = #tpu.pipeline_mode<synchronous>, transform_indices = @transform_3, window_bounds = array<i64: 2, 32, 32>}, {pipeline_mode = #tpu.pipeline_mode<synchronous>, transform_indices = @transform_4, window_bounds = array<i64: 2, 32, 1>}, {pipeline_mode = #tpu.pipeline_mode<synchronous>, transform_indices = @transform_5, window_bounds = array<i64: 1, 32>}, {transform_indices = @transform_6, window_bounds = array<i64: 1>}, {transform_indices = @transform_7, window_bounds = array<i64: 1, 256>}]} {
    %c0 = arith.constant 0 : index
    %c0_0 = arith.constant 0 : index
    %0 = vector.load %arg2[%c0, %c0_0] : memref<32x8xf32, #tpu.memory_space<vmem>>, vector<32x8xf32>
    %c0_1 = arith.constant 0 : index
    %c0_2 = arith.constant 0 : index
    %1 = vector.load %arg3[%c0_1, %c0_2] : memref<32x1xf32, #tpu.memory_space<vmem>>, vector<32x1xf32>
    %c0_3 = arith.constant 0 : index
    %c0_4 = arith.constant 0 : index
    %c0_5 = arith.constant 0 : index
    %2 = vector.load %arg4[%c0_3, %c0_4, %c0_5] : memref<2x32x32xf32, #tpu.memory_space<vmem>>, vector<2x32x32xf32>
    %c0_6 = arith.constant 0 : index
    %c0_7 = arith.constant 0 : index
    %c0_8 = arith.constant 0 : index
    %3 = vector.load %arg5[%c0_6, %c0_7, %c0_8] : memref<2x32x1xf32, #tpu.memory_space<vmem>>, vector<2x32x1xf32>
    %c0_9 = arith.constant 0 : index
    %c0_10 = arith.constant 0 : index
    %4 = vector.load %arg6[%c0_9, %c0_10] : memref<1x32xf32, #tpu.memory_space<vmem>>, vector<1x32xf32>
    %c0_11 = arith.constant 0 : index
    %5 = memref.load %arg7[%c0_11] : memref<1xf32, #tpu.memory_space<smem>>
    %c0_i32 = arith.constant 0 : i32
    %c256_i32 = arith.constant 256 : i32
    %6 = arith.muli %c0_i32, %c256_i32 : i32
    %7 = tpu.assume_multiple %6, 256 : i32
    %c0_12 = arith.constant 0 : index
    %8 = arith.index_cast %7 : i32 to index
    %9 = vector.load %arg1[%c0_12, %8] : memref<8x256xf32, #tpu.memory_space<vmem>>, vector<8x256xf32>
    %cst = arith.constant dense<0.000000e+00> : vector<32x256xf32>
    %10 = tpu.matmul %0, %9, %cst {dimension_numbers = #tpu.dot_dimension_numbers<[1], [0], [0], [1], [0, 0, 1, 1], [], []>} : vector<32x8xf32>, vector<8x256xf32>, vector<32x256xf32> -> vector<32x256xf32>
    %11 = vector.broadcast %1 : vector<32x1xf32> to vector<32x256xf32>
    %12 = arith.addf %10, %11 : vector<32x256xf32>
    %cst_13 = arith.constant dense<0.000000e+00> : vector<256xf32>
    %13 = vector.multi_reduction <add>, %12, %cst_13 [0] : vector<32x256xf32> to vector<256xf32>
    %14 = vector.shape_cast %13 : vector<256xf32> to vector<1x256xf32>
    %cst_14 = arith.constant 3.200000e+01 : f32
    %15 = vector.broadcast %cst_14 : f32 to vector<1x256xf32>
    %16 = arith.divf %14, %15 : vector<1x256xf32>
    %17 = vector.broadcast %16 : vector<1x256xf32> to vector<32x256xf32>
    %18 = arith.subf %12, %17 : vector<32x256xf32>
    %19 = arith.mulf %18, %18 : vector<32x256xf32>
    %cst_15 = arith.constant dense<0.000000e+00> : vector<256xf32>
    %20 = vector.multi_reduction <add>, %19, %cst_15 [0] : vector<32x256xf32> to vector<256xf32>
    %21 = vector.shape_cast %20 : vector<256xf32> to vector<1x256xf32>
    %cst_16 = arith.constant 3.200000e+01 : f32
    %22 = vector.broadcast %cst_16 : f32 to vector<1x256xf32>
    %23 = arith.divf %21, %22 : vector<1x256xf32>
    %cst_17 = arith.constant 9.99999974E-6 : f32
    %24 = vector.broadcast %cst_17 : f32 to vector<1x256xf32>
    %25 = arith.addf %23, %24 : vector<1x256xf32>
    %26 = math.rsqrt %25 : vector<1x256xf32>
    %27 = vector.broadcast %26 : vector<1x256xf32> to vector<32x256xf32>
    %28 = arith.mulf %18, %27 : vector<32x256xf32>
    %cst_18 = arith.constant 0.000000e+00 : f32
    %29 = vector.broadcast %cst_18 : f32 to vector<32x256xf32>
    %30 = arith.maximumf %28, %29 : vector<32x256xf32>
    %31 = vector.extract_strided_slice %2 {offsets = [0, 0, 0], sizes = [1, 32, 32], strides = [1, 1, 1]} : vector<2x32x32xf32> to vector<1x32x32xf32>
    %32 = vector.shape_cast %31 : vector<1x32x32xf32> to vector<32x32xf32>
    %cst_19 = arith.constant dense<0.000000e+00> : vector<32x256xf32>
    %33 = tpu.matmul %32, %30, %cst_19 {dimension_numbers = #tpu.dot_dimension_numbers<[1], [0], [0], [1], [0, 0, 1, 1], [], []>} : vector<32x32xf32>, vector<32x256xf32>, vector<32x256xf32> -> vector<32x256xf32>
    %34 = vector.extract_strided_slice %3 {offsets = [0, 0, 0], sizes = [1, 32, 1], strides = [1, 1, 1]} : vector<2x32x1xf32> to vector<1x32x1xf32>
    %35 = vector.shape_cast %34 : vector<1x32x1xf32> to vector<32x1xf32>
    %36 = vector.broadcast %35 : vector<32x1xf32> to vector<32x256xf32>
    %37 = arith.addf %33, %36 : vector<32x256xf32>
    %cst_20 = arith.constant dense<0.000000e+00> : vector<256xf32>
    %38 = vector.multi_reduction <add>, %37, %cst_20 [0] : vector<32x256xf32> to vector<256xf32>
    %39 = vector.shape_cast %38 : vector<256xf32> to vector<1x256xf32>
    %cst_21 = arith.constant 3.200000e+01 : f32
    %40 = vector.broadcast %cst_21 : f32 to vector<1x256xf32>
    %41 = arith.divf %39, %40 : vector<1x256xf32>
    %42 = vector.broadcast %41 : vector<1x256xf32> to vector<32x256xf32>
    %43 = arith.subf %37, %42 : vector<32x256xf32>
    %44 = arith.mulf %43, %43 : vector<32x256xf32>
    %cst_22 = arith.constant dense<0.000000e+00> : vector<256xf32>
    %45 = vector.multi_reduction <add>, %44, %cst_22 [0] : vector<32x256xf32> to vector<256xf32>
    %46 = vector.shape_cast %45 : vector<256xf32> to vector<1x256xf32>
    %cst_23 = arith.constant 3.200000e+01 : f32
    %47 = vector.broadcast %cst_23 : f32 to vector<1x256xf32>
    %48 = arith.divf %46, %47 : vector<1x256xf32>
    %cst_24 = arith.constant 9.99999974E-6 : f32
    %49 = vector.broadcast %cst_24 : f32 to vector<1x256xf32>
    %50 = arith.addf %48, %49 : vector<1x256xf32>
    %51 = math.rsqrt %50 : vector<1x256xf32>
    %52 = vector.broadcast %51 : vector<1x256xf32> to vector<32x256xf32>
    %53 = arith.mulf %43, %52 : vector<32x256xf32>
    %cst_25 = arith.constant 0.000000e+00 : f32
    %54 = vector.broadcast %cst_25 : f32 to vector<32x256xf32>
    %55 = arith.maximumf %53, %54 : vector<32x256xf32>
    %56 = vector.extract_strided_slice %2 {offsets = [1, 0, 0], sizes = [1, 32, 32], strides = [1, 1, 1]} : vector<2x32x32xf32> to vector<1x32x32xf32>
    %57 = vector.shape_cast %56 : vector<1x32x32xf32> to vector<32x32xf32>
    %cst_26 = arith.constant dense<0.000000e+00> : vector<32x256xf32>
    %58 = tpu.matmul %57, %55, %cst_26 {dimension_numbers = #tpu.dot_dimension_numbers<[1], [0], [0], [1], [0, 0, 1, 1], [], []>} : vector<32x32xf32>, vector<32x256xf32>, vector<32x256xf32> -> vector<32x256xf32>
    %59 = vector.extract_strided_slice %3 {offsets = [1, 0, 0], sizes = [1, 32, 1], strides = [1, 1, 1]} : vector<2x32x1xf32> to vector<1x32x1xf32>
    %60 = vector.shape_cast %59 : vector<1x32x1xf32> to vector<32x1xf32>
    %61 = vector.broadcast %60 : vector<32x1xf32> to vector<32x256xf32>
    %62 = arith.addf %58, %61 : vector<32x256xf32>
    %cst_27 = arith.constant dense<0.000000e+00> : vector<256xf32>
    %63 = vector.multi_reduction <add>, %62, %cst_27 [0] : vector<32x256xf32> to vector<256xf32>
    %64 = vector.shape_cast %63 : vector<256xf32> to vector<1x256xf32>
    %cst_28 = arith.constant 3.200000e+01 : f32
    %65 = vector.broadcast %cst_28 : f32 to vector<1x256xf32>
    %66 = arith.divf %64, %65 : vector<1x256xf32>
    %67 = vector.broadcast %66 : vector<1x256xf32> to vector<32x256xf32>
    %68 = arith.subf %62, %67 : vector<32x256xf32>
    %69 = arith.mulf %68, %68 : vector<32x256xf32>
    %cst_29 = arith.constant dense<0.000000e+00> : vector<256xf32>
    %70 = vector.multi_reduction <add>, %69, %cst_29 [0] : vector<32x256xf32> to vector<256xf32>
    %71 = vector.shape_cast %70 : vector<256xf32> to vector<1x256xf32>
    %cst_30 = arith.constant 3.200000e+01 : f32
    %72 = vector.broadcast %cst_30 : f32 to vector<1x256xf32>
    %73 = arith.divf %71, %72 : vector<1x256xf32>
    %cst_31 = arith.constant 9.99999974E-6 : f32
    %74 = vector.broadcast %cst_31 : f32 to vector<1x256xf32>
    %75 = arith.addf %73, %74 : vector<1x256xf32>
    %76 = math.rsqrt %75 : vector<1x256xf32>
    %77 = vector.broadcast %76 : vector<1x256xf32> to vector<32x256xf32>
    %78 = arith.mulf %68, %77 : vector<32x256xf32>
    %cst_32 = arith.constant 0.000000e+00 : f32
    %79 = vector.broadcast %cst_32 : f32 to vector<32x256xf32>
    %80 = arith.maximumf %78, %79 : vector<32x256xf32>
    %cst_33 = arith.constant dense<0.000000e+00> : vector<1x256xf32>
    %81 = tpu.matmul %4, %80, %cst_33 {dimension_numbers = #tpu.dot_dimension_numbers<[1], [0], [0], [1], [0, 0, 1, 1], [], []>} : vector<1x32xf32>, vector<32x256xf32>, vector<1x256xf32> -> vector<1x256xf32>
    %82 = vector.broadcast %5 : f32 to vector<1x256xf32>
    %83 = arith.addf %81, %82 : vector<1x256xf32>
    %cst_34 = arith.constant 0.000000e+00 : f32
    %84 = vector.broadcast %cst_34 : f32 to vector<1x256xf32>
    %85 = arith.subf %84, %83 : vector<1x256xf32>
    %86 = math.exp %85 : vector<1x256xf32>
    %cst_35 = arith.constant 1.000000e+00 : f32
    %87 = vector.broadcast %cst_35 : f32 to vector<1x256xf32>
    %88 = arith.addf %87, %86 : vector<1x256xf32>
    %89 = tpu.reciprocal %88 {approx = true} : vector<1x256xf32> -> vector<1x256xf32>
    %c0_36 = arith.constant 0 : index
    %90 = arith.index_cast %7 : i32 to index
    %91 = vector.load %arg8[%c0_36, %90] : memref<1x256xf32, #tpu.memory_space<vmem>>, vector<1x256xf32>
    tpu.vector_store %arg8[%c0_36, %90], %89 {strides = array<i32>} : memref<1x256xf32, #tpu.memory_space<vmem>>, vector<1x256xf32>,
    %c1_i32 = arith.constant 1 : i32
    return
  }
  func.func @transform_0(%arg0: i32) -> (i32, i32) {
    %c0_i32 = arith.constant 0 : i32
    %c0_i32_0 = arith.constant 0 : i32
    return %c0_i32, %arg0 : i32, i32
  }
  func.func @transform_1(%arg0: i32) -> (i32, i32) {
    %c0_i32 = arith.constant 0 : i32
    %c0_i32_0 = arith.constant 0 : i32
    %c0_i32_1 = arith.constant 0 : i32
    return %c0_i32, %c0_i32_0 : i32, i32
  }
  func.func @transform_2(%arg0: i32) -> (i32, i32) {
    %c0_i32 = arith.constant 0 : i32
    %c0_i32_0 = arith.constant 0 : i32
    %c0_i32_1 = arith.constant 0 : i32
    return %c0_i32, %c0_i32_0 : i32, i32
  }
  func.func @transform_3(%arg0: i32) -> (i32, i32, i32) {
    %c0_i32 = arith.constant 0 : i32
    %c0_i32_0 = arith.constant 0 : i32
    %c0_i32_1 = arith.constant 0 : i32
    %c0_i32_2 = arith.constant 0 : i32
    return %c0_i32, %c0_i32_0, %c0_i32_1 : i32, i32, i32
  }
  func.func @transform_4(%arg0: i32) -> (i32, i32, i32) {
    %c0_i32 = arith.constant 0 : i32
    %c0_i32_0 = arith.constant 0 : i32
    %c0_i32_1 = arith.constant 0 : i32
    %c0_i32_2 = arith.constant 0 : i32
    return %c0_i32, %c0_i32_0, %c0_i32_1 : i32, i32, i32
  }
  func.func @transform_5(%arg0: i32) -> (i32, i32) {
    %c0_i32 = arith.constant 0 : i32
    %c0_i32_0 = arith.constant 0 : i32
    %c0_i32_1 = arith.constant 0 : i32
    return %c0_i32, %c0_i32_0 : i32, i32
  }
  func.func @transform_6(%arg0: i32) -> i32 {
    %c0_i32 = arith.constant 0 : i32
    %c0_i32_0 = arith.constant 0 : i32
    return %c0_i32 : i32
  }
  func.func @transform_7(%arg0: i32) -> (i32, i32) {
    %c0_i32 = arith.constant 0 : i32
    %c0_i32_0 = arith.constant 0 : i32
    return %c0_i32, %arg0 : i32, i32
  }
}

</mosaic_0001>

<bundles_post_ra>
// kernel: occupancy_field.1
= control target key start
LH: loop header
LB: loop body
LE: loop exit
PB: predicated region body
PF: predicated region fallthrough
CT: control target
= control target key end

     0   :  { %vm76_vm0 = vcmask 64512   ;;  %v861_v4 = vmov 0.0   ;;  %v862_v9 = vmov 0   ;;  %s1027_s0 = inlined_call_operand.vmem [shape: f32[8,256], index: 0, kind: input, shape index: {}]   ;;  %s1028_s1 = inlined_call_operand.vmem [shape: f32[32,8], index: 1, kind: input, shape index: {}]   ;;  %s1029_s2 = inlined_call_operand.vmem [shape: f32[32,1], index: 2, kind: input, shape index: {}]   ;;  %s1030_s3 = inlined_call_operand.vmem [shape: f32[2,32,32], index: 3, kind: input, shape index: {}]   ;;  %s1031_s4 = inlined_call_operand.vmem [shape: f32[2,32,1], index: 4, kind: input, shape index: {}]   ;;  %s1032_s5 = inlined_call_operand.vmem [shape: f32[1,32], index: 5, kind: input, shape index: {}]   ;;  %s1033_s6 = inlined_call_operand.<no memory space> [shape: f32[1], index: 6, kind: input, shape index: {}]   ;;  %s1034_s7 = inlined_call_operand.hbm [shape: f32[1,256], index: 7, kind: output, shape index: {}]  }
   0x1   :  { %v55_v0 = vld [vmem:[%s1027_s0 + $0x8] sm:$0xff]  ;;  %v54_v1 = vld [vmem:[%s1027_s0] sm:$0xff]  ;;  %v30_v3 = vld [vmem:[%s1028_s1 + $0x10] sm:$0xff]  ;;  %153 = vmatprep.mubr.f32.mxu0 %v861_v4  ;;  %165 = vmatprep.mubr.f32.mxu1 %v861_v4 }
   0x2   :  { %89 = vmatprep.subr.mxu0 %v55_v0  ;;  %809 = vmatprep.subr.mxu1 %v55_v0  ;;  %v28_v2 = vld [vmem:[%s1028_s1] sm:$0xff]  ;;  %v34_v6 = vld [vmem:[%s1029_s2 + $0x10] sm:$0xff]  ;;  %v29_v7 = vld [vmem:[%s1028_s1 + $0x8] sm:$0xff] }
   0x3   :  { %90 = vmatpush1.msra.mxu0 %v54_v1  ;;  %810 = vmatpush1.msra.mxu1 %v54_v1  ;;  %v32_v5 = vld [vmem:[%s1029_s2] sm:$0xff]  ;;  %v31_v8 = vld [vmem:[%s1028_s1 + $0x18] sm:$0xff] }
   0x4   :  { %772 = vmatmul.mubr.msk.f32.vlgmr.msra.gmra.mrb[0].mxu0 %vm76_vm0, %v28_v2  ;;  %774 = vmatmul.mubr.msk.f32.vlgmr.msra.gmra.mrb[0].mxu1 %vm76_vm0, %v30_v3 }
   0x5   :  { %159 = vmatprep.mubr.f32.mxu0 %v861_v4  ;;  %171 = vmatprep.mubr.f32.mxu1 %v861_v4 }
   0x6   :  { %815 = vset.pattern.permute.xlu0 %v862_v9  ;;  %816 = vset.pattern.permute.xlu1 %v862_v9 }
   0x7   :  { %13 = vsyncpa [#allocation4], 0  ;;  %58 = vperm.xlu0 %815, %v32_v5   ;;  %68 = vperm.xlu1 %816, %v34_v6   ;;  %v33_v10 = vld [vmem:[%s1029_s2 + $0x8] sm:$0xff]  ;;  %v35_v11 = vld [vmem:[%s1029_s2 + $0x18] sm:$0xff]  ;;  %vm275_vm1 = vcmask 261120  }
   0x8   :  { %773 = vmatmul.mubr.msk.f32.gmra.mrb[2].mxu0 %vm76_vm0, %v29_v7  ;;  %775 = vmatmul.mubr.msk.f32.gmra.mrb[2].mxu1 %vm76_vm0, %v31_v8  ;;  %v44_v12 = vld [vmem:[%s1031_s4] sm:$0xff]  ;;  %v45_v13 = vld [vmem:[%s1031_s4 + $0x8] sm:$0xff]  ;;  %v46_v14 = vld [vmem:[%s1031_s4 + $0x10] sm:$0xff] }
   0x9   :  { %352 = vmatprep.mubr.f32.mxu1 %v861_v4  ;;  %549 = vmatprep.mubr.f32.mxu0 %v861_v4  ;;  %v47_v15 = vld [vmem:[%s1031_s4 + $0x18] sm:$0xff]  ;;  %v48_v16 = vld [vmem:[%s1031_s4 + $0x20] sm:$0xff]  ;;  %v49_v17 = vld [vmem:[%s1031_s4 + $0x28] sm:$0xff] }
   0xa   :  { %v50_v18 = vld [vmem:[%s1031_s4 + $0x30] sm:$0xff]  ;;  %v51_v19 = vld [vmem:[%s1031_s4 + $0x38] sm:$0xff] }
   0xb   :  { %63 = vperm.xlu0 %815, %v33_v10   ;;  %73 = vperm.xlu1 %816, %v35_v11  }
   0xf   :  { %257 = vperm.xlu0 %815, %v44_v12   ;;  %262 = vperm.xlu1 %816, %v45_v13  }
  0x13   :  { %267 = vperm.xlu0 %815, %v46_v14   ;;  %272 = vperm.xlu1 %816, %v47_v15  }
  0x17   :  { %455 = vperm.xlu0 %815, %v48_v16   ;;  %460 = vperm.xlu1 %816, %v49_v17  }
  0x1b   :  { %465 = vperm.xlu0 %815, %v50_v18   ;;  %470 = vperm.xlu1 %816, %v51_v19  }
  0x86   :  { %v59_v20 = vpop.permute.xlu0 %58  ;;  %v69_v25 = vpop.permute.xlu1 %68 }
  0x8a   :  { %v64_v26 = vpop.permute.xlu0 %63  ;;  %v74_v37 = vpop.permute.xlu1 %73 }
  0xd7   :  { %v155_v21 = vpop.f32.mrb[0].mxu0  ;;  %v167_v22 = vpop.f32.mrb[0].mxu1 }
  0xd8   :  { %v157_v23 = vpop.f32.mrb[1].mxu0  ;;  %v169_v24 = vpop.f32.mrb[1].mxu1  ;;  %v156_v29 = vadd.f32 %v155_v21, %v59_v20  ;;  %v168_v35 = vadd.f32 %v167_v22, %v69_v25 }
  0xd9   :  { %v158_v33 = vadd.f32 %v157_v23, %v59_v20  ;;  %v170_v38 = vadd.f32 %v169_v24, %v69_v25 }
  0xdb   :  { %v161_v27 = vpop.f32.mrb[2].mxu0  ;;  %v173_v28 = vpop.f32.mrb[2].mxu1 }
  0xdc   :  { %v162_v30 = vadd.f32 %v161_v27, %v64_v26  ;;  %v163_v31 = vpop.f32.mrb[3].mxu0  ;;  %v175_v32 = vpop.f32.mrb[3].mxu1  ;;  %v174_v40 = vadd.f32 %v173_v28, %v74_v37 }
  0xdd   :  { %v164_v34 = vadd.f32 %v163_v31, %v64_v26  ;;  %v176_v42 = vadd.f32 %v175_v32, %v74_v37 }
  0xde   :  { %v178_v36 = vadd.f32 %v162_v30, %v156_v29 }
  0xdf   :  { %v187_v39 = vadd.f32 %v164_v34, %v158_v33 }
  0xe0   :  { %v179_v41 = vadd.f32 %v178_v36, %v168_v35 }
  0xe1   :  { %v188_v43 = vadd.f32 %v187_v39, %v170_v38 }
  0xe2   :  { %v180_v44 = vadd.f32 %v179_v41, %v174_v40 }
  0xe3   :  { %v189_v45 = vadd.f32 %v188_v43, %v176_v42 }
  0xe4   :  { %v181_v46 = vrot.slane %v180_v44, 4 }
  0xe5   :  { %v190_v47 = vrot.slane %v189_v45, 4 }
  0xe6   :  { %v182_v48 = vadd.f32 %v181_v46, %v180_v44 }
  0xe7   :  { %v191_v49 = vadd.f32 %v190_v47, %v189_v45 }
  0xe8   :  { %v183_v50 = vrot.slane %v182_v48, 2 }
  0xe9   :  { %v192_v51 = vrot.slane %v191_v49, 2 }
  0xea   :  { %v184_v52 = vadd.f32 %v183_v50, %v182_v48 }
  0xeb   :  { %v193_v53 = vadd.f32 %v192_v51, %v191_v49 }
  0xec   :  { %v185_v54 = vrot.slane %v184_v52, 1 }
  0xed   :  { %v194_v55 = vrot.slane %v193_v53, 1 }
  0xee   :  { %v186_v56 = vadd.f32 %v185_v54, %v184_v52 }
  0xef   :  { %v195_v57 = vadd.f32 %v194_v55, %v193_v53 }
  0xf0   :  { %v197_v58 = vmul.f32 0.03125, %v186_v56 }
  0xf1   :  { %v198_v59 = vmul.f32 0.03125, %v195_v57  ;;  %v36_v57 = vld [vmem:[%s1030_s3] sm:$0xff] }
  0xf2   :  { %v199_v60 = vsub.f32 %v156_v29, %v197_v58  ;;  %v201_v61 = vsub.f32 %v162_v30, %v197_v58  ;;  %v203_v62 = vsub.f32 %v168_v35, %v197_v58  ;;  %v205_v63 = vsub.f32 %v174_v40, %v197_v58  ;;  %v37_v58 = vld [vmem:[%s1030_s3 + $0x8] sm:$0xff] }
  0xf3   :  { %v200_v0 = vsub.f32 %v158_v33, %v198_v59  ;;  %v202_v1 = vsub.f32 %v164_v34, %v198_v59  ;;  %v204_v2 = vsub.f32 %v170_v38, %v198_v59  ;;  %v206_v3 = vsub.f32 %v176_v42, %v198_v59  ;;  %v38_v59 = vld [vmem:[%s1030_s3 + $0x10] sm:$0xff] }
  0xf4   :  { %v207_v5 = vmul.f32 %v199_v60, %v199_v60  ;;  %v209_v6 = vmul.f32 %v201_v61, %v201_v61  ;;  %v211_v9 = vmul.f32 %v203_v62, %v203_v62  ;;  %v213_v13 = vmul.f32 %v205_v63, %v205_v63 }
  0xf5   :  { %v208_v7 = vmul.f32 %v200_v0, %v200_v0  ;;  %v210_v8 = vmul.f32 %v202_v1, %v202_v1  ;;  %v212_v11 = vmul.f32 %v204_v2, %v204_v2  ;;  %v214_v15 = vmul.f32 %v206_v3, %v206_v3 }
  0xf6   :  { %v215_v10 = vadd.f32 %v209_v6, %v207_v5 }
  0xf7   :  { %v224_v12 = vadd.f32 %v210_v8, %v208_v7 }
  0xf8   :  { %v216_v14 = vadd.f32 %v215_v10, %v211_v9 }
  0xf9   :  { %v225_v16 = vadd.f32 %v224_v12, %v212_v11 }
  0xfa   :  { %v217_v17 = vadd.f32 %v216_v14, %v213_v13 }
  0xfb   :  { %v226_v18 = vadd.f32 %v225_v16, %v214_v15 }
  0xfc   :  { %v218_v19 = vrot.slane %v217_v17, 4 }
  0xfd   :  { %v227_v20 = vrot.slane %v226_v18, 4 }
  0xfe   :  { %v219_v21 = vadd.f32 %v218_v19, %v217_v17 }
  0xff   :  { %v228_v22 = vadd.f32 %v227_v20, %v226_v18 }
 0x100   :  { %v220_v23 = vrot.slane %v219_v21, 2 }
 0x101   :  { %v229_v24 = vrot.slane %v228_v22, 2 }
 0x102   :  { %v221_v25 = vadd.f32 %v220_v23, %v219_v21 }
 0x103   :  { %v230_v26 = vadd.f32 %v229_v24, %v228_v22 }
 0x104   :  { %v222_v27 = vrot.slane %v221_v25, 1 }
 0x105   :  { %v231_v28 = vrot.slane %v230_v26, 1 }
 0x106   :  { %v223_v29 = vadd.f32 %v222_v27, %v221_v25 }
 0x107   :  { %v232_v30 = vadd.f32 %v231_v28, %v230_v26 }
 0x108   :  { %v233_v31 = vmul.f32 0.03125, %v223_v29 }
 0x109   :  { %v234_v32 = vmul.f32 0.03125, %v232_v30 }
 0x10a   :  { %v235_v33 = vadd.f32 1e-05, %v233_v31 }
 0x10b   :  { %v236_v34 = vadd.f32 1e-05, %v234_v32 }
 0x10c   :  { %817 = vrsqrt.f32 %v235_v33 }
 0x10d   :  { %819 = vrsqrt.f32 %v236_v34 }
 0x116   :  { %v818_v35 = vpop.eup %817 }
 0x117   :  { %v820_v36 = vpop.eup %819  ;;  %v243_v37 = vmul.f32 %v818_v35, %v203_v62  ;;  %v245_v38 = vmul.f32 %v818_v35, %v205_v63  ;;  %v239_v39 = vmul.f32 %v818_v35, %v199_v60  ;;  %v241_v40 = vmul.f32 %v818_v35, %v201_v61  ;;  %v39_v60 = vld [vmem:[%s1030_s3 + $0x18] sm:$0xff]  ;;  %v258_v63 = vpop.permute.xlu0 %257 }
 0x118   :  { %v246_v41 = vmul.f32 %v820_v36, %v206_v3  ;;  %v240_v42 = vmul.f32 %v820_v36, %v200_v0  ;;  %v242_v43 = vmul.f32 %v820_v36, %v202_v1  ;;  %v244_v44 = vmul.f32 %v820_v36, %v204_v2  ;;  %v263_v0 = vpop.permute.xlu1 %262 }
 0x119   :  { %v251_v45 = vmax.f32 %v243_v37, 0.0  ;;  %v253_v46 = vmax.f32 %v245_v38, 0.0  ;;  %v247_v47 = vmax.f32 %v239_v39, 0.0  ;;  %v249_v48 = vmax.f32 %v241_v40, 0.0 }
 0x11a   :  { %v254_v49 = vmax.f32 %v246_v41, 0.0  ;;  %v248_v50 = vmax.f32 %v240_v42, 0.0  ;;  %v250_v51 = vmax.f32 %v242_v43, 0.0  ;;  %v252_v52 = vmax.f32 %v244_v44, 0.0 }
 0x11b   :  { %v791_v53 = vpack.c.bf16 %v253_v46, %v251_v45  ;;  %v787_v54 = vpack.c.bf16 %v249_v48, %v247_v47  ;;  %v268_v9 = vpop.permute.xlu0 %267 }
 0x11c   :  { %v785_v55 = vpack.c.bf16 %v250_v51, %v248_v50  ;;  %v789_v56 = vpack.c.bf16 %v254_v49, %v252_v52  ;;  %v273_v16 = vpop.permute.xlu1 %272 }
 0x11e   :  { %786 = vmatprep.subr.bf16.mxu1 %v785_v55 }
 0x11f   :  { %788 = vmatpush1.bf16.msra.mxu1 %v787_v54 }
 0x120   :  { %790 = vmatprep.subr.bf16.mxu1 %v789_v56 }
 0x123   :  { %792 = vmatpush1.bf16.msra.mxu1 %v791_v53 }
 0x126   :  { %776 = vmatmul.mubr.msk.f32.vlgmr.msra.gmra.mrb[4].mxu1 %vm275_vm1, %v36_v57 }
 0x127   :  { %358 = vmatprep.mubr.f32.mxu1 %v861_v4 }
 0x12a   :  { %777 = vmatmul.mubr.msk.f32.gmra.mrb[6].mxu1 %vm275_vm1, %v37_v58 }
 0x12b   :  { %364 = vmatprep.mubr.f32.mxu1 %v861_v4 }
 0x12e   :  { %778 = vmatmul.mubr.msk.f32.gmra.mrb[8].mxu1 %vm275_vm1, %v38_v59 }
 0x12f   :  { %370 = vmatprep.mubr.f32.mxu1 %v861_v4 }
 0x132   :  { %779 = vmatmul.mubr.msk.f32.gmra.mrb[10].mxu1 %vm275_vm1, %v39_v60 }
 0x133   :  { %718 = vmatprep.mubr.f32.mxu1 %v861_v4 }
 0x1f9   :  { %v354_v61 = vpop.f32.mrb[4].mxu1 }
 0x1fa   :  { %v356_v62 = vpop.f32.mrb[5].mxu1  ;;  %v355_v2 = vadd.f32 %v354_v61, %v258_v63 }
 0x1fb   :  { %v357_v6 = vadd.f32 %v356_v62, %v258_v63 }
 0x1fd   :  { %v360_v1 = vpop.f32.mrb[6].mxu1 }
 0x1fe   :  { %v361_v3 = vadd.f32 %v360_v1, %v263_v0  ;;  %v362_v5 = vpop.f32.mrb[7].mxu1 }
 0x1ff   :  { %v363_v7 = vadd.f32 %v362_v5, %v263_v0 }
 0x200   :  { %v377_v8 = vadd.f32 %v361_v3, %v355_v2 }
 0x201   :  { %v386_v10 = vadd.f32 %v363_v7, %v357_v6  ;;  %v366_v11 = vpop.f32.mrb[8].mxu1 }
 0x202   :  { %v367_v12 = vadd.f32 %v366_v11, %v268_v9  ;;  %v368_v13 = vpop.f32.mrb[9].mxu1 }
 0x203   :  { %v369_v14 = vadd.f32 %v368_v13, %v268_v9 }
 0x204   :  { %v378_v15 = vadd.f32 %v377_v8, %v367_v12 }
 0x205   :  { %v387_v17 = vadd.f32 %v386_v10, %v369_v14  ;;  %v372_v18 = vpop.f32.mrb[10].mxu1 }
 0x206   :  { %v373_v19 = vadd.f32 %v372_v18, %v273_v16  ;;  %v374_v20 = vpop.f32.mrb[11].mxu1 }
 0x207   :  { %v375_v21 = vadd.f32 %v374_v20, %v273_v16 }
 0x208   :  { %v379_v22 = vadd.f32 %v378_v15, %v373_v19 }
 0x209   :  { %v388_v23 = vadd.f32 %v387_v17, %v375_v21 }
 0x20a   :  { %v380_v24 = vrot.slane %v379_v22, 4 }
 0x20b   :  { %v389_v25 = vrot.slane %v388_v23, 4 }
 0x20c   :  { %v381_v26 = vadd.f32 %v380_v24, %v379_v22 }
 0x20d   :  { %v390_v27 = vadd.f32 %v389_v25, %v388_v23 }
 0x20e   :  { %v382_v28 = vrot.slane %v381_v26, 2 }
 0x20f   :  { %v391_v29 = vrot.slane %v390_v27, 2 }
 0x210   :  { %v383_v30 = vadd.f32 %v382_v28, %v381_v26 }
 0x211   :  { %v392_v31 = vadd.f32 %v391_v29, %v390_v27 }
 0x212   :  { %v384_v32 = vrot.slane %v383_v30, 1 }
 0x213   :  { %v393_v33 = vrot.slane %v392_v31, 1 }
 0x214   :  { %v385_v34 = vadd.f32 %v384_v32, %v383_v30 }
 0x215   :  { %v394_v35 = vadd.f32 %v393_v33, %v392_v31 }
 0x216   :  { %v395_v36 = vmul.f32 0.03125, %v385_v34 }
 0x217   :  { %v396_v37 = vmul.f32 0.03125, %v394_v35  ;;  %v40_v35 = vld [vmem:[%s1030_s3 + $0x20] sm:$0xff] }
 0x218   :  { %v397_v38 = vsub.f32 %v355_v2, %v395_v36  ;;  %v399_v39 = vsub.f32 %v361_v3, %v395_v36  ;;  %v401_v40 = vsub.f32 %v367_v12, %v395_v36  ;;  %v403_v41 = vsub.f32 %v373_v19, %v395_v36  ;;  %v41_v36 = vld [vmem:[%s1030_s3 + $0x28] sm:$0xff] }
 0x219   :  { %v398_v42 = vsub.f32 %v357_v6, %v396_v37  ;;  %v400_v43 = vsub.f32 %v363_v7, %v396_v37  ;;  %v402_v44 = vsub.f32 %v369_v14, %v396_v37  ;;  %v404_v45 = vsub.f32 %v375_v21, %v396_v37  ;;  %v42_v37 = vld [vmem:[%s1030_s3 + $0x30] sm:$0xff] }
 0x21a   :  { %v405_v46 = vmul.f32 %v397_v38, %v397_v38  ;;  %v407_v47 = vmul.f32 %v399_v39, %v399_v39  ;;  %v409_v50 = vmul.f32 %v401_v40, %v401_v40  ;;  %v411_v54 = vmul.f32 %v403_v41, %v403_v41 }
 0x21b   :  { %v406_v48 = vmul.f32 %v398_v42, %v398_v42  ;;  %v408_v49 = vmul.f32 %v400_v43, %v400_v43  ;;  %v410_v52 = vmul.f32 %v402_v44, %v402_v44  ;;  %v412_v56 = vmul.f32 %v404_v45, %v404_v45 }
 0x21c   :  { %v413_v51 = vadd.f32 %v407_v47, %v405_v46 }
 0x21d   :  { %v422_v53 = vadd.f32 %v408_v49, %v406_v48 }
 0x21e   :  { %v414_v55 = vadd.f32 %v413_v51, %v409_v50 }
 0x21f   :  { %v423_v57 = vadd.f32 %v422_v53, %v410_v52 }
 0x220   :  { %v415_v58 = vadd.f32 %v414_v55, %v411_v54 }
 0x221   :  { %v424_v59 = vadd.f32 %v423_v57, %v412_v56 }
 0x222   :  { %v416_v60 = vrot.slane %v415_v58, 4 }
 0x223   :  { %v425_v61 = vrot.slane %v424_v59, 4 }
 0x224   :  { %v417_v62 = vadd.f32 %v416_v60, %v415_v58 }
 0x225   :  { %v426_v63 = vadd.f32 %v425_v61, %v424_v59 }
 0x226   :  { %v418_v0 = vrot.slane %v417_v62, 2 }
 0x227   :  { %v427_v1 = vrot.slane %v426_v63, 2 }
 0x228   :  { %v419_v2 = vadd.f32 %v418_v0, %v417_v62 }
 0x229   :  { %v428_v3 = vadd.f32 %v427_v1, %v426_v63 }
 0x22a   :  { %v420_v5 = vrot.slane %v419_v2, 1 }
 0x22b   :  { %v429_v6 = vrot.slane %v428_v3, 1 }
 0x22c   :  { %v421_v7 = vadd.f32 %v420_v5, %v419_v2 }
 0x22d   :  { %v430_v8 = vadd.f32 %v429_v6, %v428_v3 }
 0x22e   :  { %v431_v9 = vmul.f32 0.03125, %v421_v7 }
 0x22f   :  { %v432_v10 = vmul.f32 0.03125, %v430_v8 }
 0x230   :  { %v433_v11 = vadd.f32 1e-05, %v431_v9 }
 0x231   :  { %v434_v12 = vadd.f32 1e-05, %v432_v10 }
 0x232   :  { %821 = vrsqrt.f32 %v433_v11 }
 0x233   :  { %823 = vrsqrt.f32 %v434_v12 }
 0x23c   :  { %v822_v13 = vpop.eup %821 }
 0x23d   :  { %v824_v14 = vpop.eup %823  ;;  %v441_v15 = vmul.f32 %v822_v13, %v401_v40  ;;  %v443_v16 = vmul.f32 %v822_v13, %v403_v41  ;;  %v437_v17 = vmul.f32 %v822_v13, %v397_v38  ;;  %v439_v18 = vmul.f32 %v822_v13, %v399_v39  ;;  %v43_v38 = vld [vmem:[%s1030_s3 + $0x38] sm:$0xff]  ;;  %v456_v41 = vpop.permute.xlu0 %455 }
 0x23e   :  { %v444_v19 = vmul.f32 %v824_v14, %v404_v45  ;;  %v438_v20 = vmul.f32 %v824_v14, %v398_v42  ;;  %v440_v21 = vmul.f32 %v824_v14, %v400_v43  ;;  %v442_v22 = vmul.f32 %v824_v14, %v402_v44  ;;  %v461_v42 = vpop.permute.xlu1 %460 }
 0x23f   :  { %v449_v23 = vmax.f32 %v441_v15, 0.0  ;;  %v451_v24 = vmax.f32 %v443_v16, 0.0  ;;  %v445_v25 = vmax.f32 %v437_v17, 0.0  ;;  %v447_v26 = vmax.f32 %v439_v18, 0.0 }
 0x240   :  { %v452_v27 = vmax.f32 %v444_v19, 0.0  ;;  %v446_v28 = vmax.f32 %v438_v20, 0.0  ;;  %v448_v29 = vmax.f32 %v440_v21, 0.0  ;;  %v450_v30 = vmax.f32 %v442_v22, 0.0 }
 0x241   :  { %v799_v31 = vpack.c.bf16 %v451_v24, %v449_v23  ;;  %v795_v32 = vpack.c.bf16 %v447_v26, %v445_v25  ;;  %v466_v50 = vpop.permute.xlu0 %465 }
 0x242   :  { %v793_v33 = vpack.c.bf16 %v448_v29, %v446_v28  ;;  %v797_v34 = vpack.c.bf16 %v452_v27, %v450_v30  ;;  %v471_v56 = vpop.permute.xlu1 %470 }
 0x244   :  { %794 = vmatprep.subr.bf16.mxu0 %v793_v33 }
 0x245   :  { %796 = vmatpush1.bf16.msra.mxu0 %v795_v32 }
 0x246   :  { %798 = vmatprep.subr.bf16.mxu0 %v797_v34 }
 0x249   :  { %800 = vmatpush1.bf16.msra.mxu0 %v799_v31 }
 0x24c   :  { %780 = vmatmul.mubr.msk.f32.vlgmr.msra.gmra.mrb[4].mxu0 %vm275_vm1, %v40_v35 }
 0x24d   :  { %555 = vmatprep.mubr.f32.mxu0 %v861_v4 }
 0x250   :  { %781 = vmatmul.mubr.msk.f32.gmra.mrb[6].mxu0 %vm275_vm1, %v41_v36 }
 0x251   :  { %561 = vmatprep.mubr.f32.mxu0 %v861_v4 }
 0x254   :  { %782 = vmatmul.mubr.msk.f32.gmra.mrb[8].mxu0 %vm275_vm1, %v42_v37 }
 0x255   :  { %567 = vmatprep.mubr.f32.mxu0 %v861_v4 }
 0x258   :  { %783 = vmatmul.mubr.msk.f32.gmra.mrb[10].mxu0 %vm275_vm1, %v43_v38 }
 0x31f   :  { %v551_v39 = vpop.f32.mrb[4].mxu0 }
 0x320   :  { %v553_v40 = vpop.f32.mrb[5].mxu0  ;;  %v552_v44 = vadd.f32 %v551_v39, %v456_v41 }
 0x321   :  { %v554_v47 = vadd.f32 %v553_v40, %v456_v41 }
 0x323   :  { %v557_v43 = vpop.f32.mrb[6].mxu0 }
 0x324   :  { %v558_v45 = vadd.f32 %v557_v43, %v461_v42  ;;  %v559_v46 = vpop.f32.mrb[7].mxu0 }
 0x325   :  { %v560_v48 = vadd.f32 %v559_v46, %v461_v42 }
 0x326   :  { %v574_v49 = vadd.f32 %v558_v45, %v552_v44 }
 0x327   :  { %v583_v51 = vadd.f32 %v560_v48, %v554_v47  ;;  %v563_v4 = vpop.f32.mrb[8].mxu0 }
 0x328   :  { %v564_v52 = vadd.f32 %v563_v4, %v466_v50  ;;  %v565_v53 = vpop.f32.mrb[9].mxu0 }
 0x329   :  { %v566_v54 = vadd.f32 %v565_v53, %v466_v50 }
 0x32a   :  { %v575_v55 = vadd.f32 %v574_v49, %v564_v52 }
 0x32b   :  { %v584_v57 = vadd.f32 %v583_v51, %v566_v54  ;;  %v569_v58 = vpop.f32.mrb[10].mxu0 }
 0x32c   :  { %v570_v59 = vadd.f32 %v569_v58, %v471_v56  ;;  %v571_v60 = vpop.f32.mrb[11].mxu0 }
 0x32d   :  { %v572_v61 = vadd.f32 %v571_v60, %v471_v56 }
 0x32e   :  { %v576_v62 = vadd.f32 %v575_v55, %v570_v59 }
 0x32f   :  { %v585_v63 = vadd.f32 %v584_v57, %v572_v61 }
 0x330   :  { %v577_v0 = vrot.slane %v576_v62, 4 }
 0x331   :  { %v586_v1 = vrot.slane %v585_v63, 4 }
 0x332   :  { %v578_v2 = vadd.f32 %v577_v0, %v576_v62 }
 0x333   :  { %v587_v3 = vadd.f32 %v586_v1, %v585_v63 }
 0x334   :  { %v579_v5 = vrot.slane %v578_v2, 2 }
 0x335   :  { %v588_v6 = vrot.slane %v587_v3, 2 }
 0x336   :  { %v580_v7 = vadd.f32 %v579_v5, %v578_v2 }
 0x337   :  { %v589_v8 = vadd.f32 %v588_v6, %v587_v3 }
 0x338   :  { %v581_v9 = vrot.slane %v580_v7, 1 }
 0x339   :  { %v590_v10 = vrot.slane %v589_v8, 1 }
 0x33a   :  { %v582_v11 = vadd.f32 %v581_v9, %v580_v7 }
 0x33b   :  { %v591_v12 = vadd.f32 %v590_v10, %v589_v8 }
 0x33c   :  { %v592_v13 = vmul.f32 0.03125, %v582_v11  ;;  %v52_v11 = vld [vmem:[%s1032_s5] sm:$0x1]  ;;  %s864_s5 = smov [#allocation3]  }
 0x33d   :  { %v593_v14 = vmul.f32 0.03125, %v591_v12  ;;  %v650_v12 = vstv %s1033_s6  ;;  %s764_s6 = sshll.u32 %s864_s5, 4  ;;  %s765_s6 = int_to_ptr.vmem [resolvable:$true] %s764_s6 }
 0x33e   :  { %v594_v15 = vsub.f32 %v552_v44, %v592_v13  ;;  %v596_v16 = vsub.f32 %v558_v45, %v592_v13  ;;  %v598_v17 = vsub.f32 %v564_v52, %v592_v13  ;;  %v600_v18 = vsub.f32 %v570_v59, %v592_v13  ;;  %s837_s26 = scalar_lea.vmem %s765_s6, 32  ;;  %p842_p1 = scmp.lt.s32.totalorder %s765_s6, %s765_s6 }
 0x33f   :  { %v595_v19 = vsub.f32 %v554_v47, %v593_v14  ;;  %v597_v20 = vsub.f32 %v560_v48, %v593_v14  ;;  %v599_v21 = vsub.f32 %v566_v54, %v593_v14  ;;  %v601_v22 = vsub.f32 %v572_v61, %v593_v14  ;;  %p838_p0 = scmp.ne.s32.totalorder %s765_s6, %s837_s26  ;;  %p843_p2 = scmp.lt.s32.totalorder %s837_s26, %s837_s26 }
 0x340   :  { %v602_v23 = vmul.f32 %v594_v15, %v594_v15  ;;  %v604_v24 = vmul.f32 %v596_v16, %v596_v16  ;;  %v606_v27 = vmul.f32 %v598_v17, %v598_v17  ;;  %v608_v31 = vmul.f32 %v600_v18, %v600_v18 }
 0x341   :  { %v603_v25 = vmul.f32 %v595_v19, %v595_v19  ;;  %v605_v26 = vmul.f32 %v597_v20, %v597_v20  ;;  %v607_v29 = vmul.f32 %v599_v21, %v599_v21  ;;  %v609_v33 = vmul.f32 %v601_v22, %v601_v22  ;;  %p844_p3 = por %p843_p2, %p842_p1 }
 0x342   :  { %v610_v28 = vadd.f32 %v604_v24, %v602_v23 }
 0x343   :  { %v619_v30 = vadd.f32 %v605_v26, %v603_v25  ;;  %v863_v25 = vmov 1966171168   ;;  %p845_p4 = pnand %p844_p3, %p838_p0 }
 0x344   :  { %v611_v32 = vadd.f32 %v610_v28, %v606_v27  ;;  %v739_v26 = vunpack.c.l.s4 %v863_v25  ;;  %v741_v27 = vlaneseq }
 0x345   :  { %v620_v34 = vadd.f32 %v619_v30, %v607_v29 }
 0x346   :  { %v612_v35 = vadd.f32 %v611_v32, %v608_v31  ;;  %v740_v28 = vunpack.c.0.s8 %v739_v26  ;;  %v742_v29 = vshrl.u32 %v741_v27, 7  ;;  %vm755_vm2 = vcmp.lt.s32.totalorder %v741_v27, 256 }
 0x347   :  { %v621_v36 = vadd.f32 %v620_v34, %v609_v33 }
 0x348   :  { %v613_v37 = vrot.slane %v612_v35, 4  ;;  %v743_v31 = vsub.s32 %v740_v28, %v742_v29 }
 0x349   :  { %v622_v38 = vrot.slane %v621_v36, 4 }
 0x34a   :  { %v614_v39 = vadd.f32 %v613_v37, %v612_v35 }
 0x34b   :  { %v623_v40 = vadd.f32 %v622_v38, %v621_v36 }
 0x34c   :  { %v615_v41 = vrot.slane %v614_v39, 2 }
 0x34d   :  { %v624_v42 = vrot.slane %v623_v40, 2 }
 0x34e   :  { %v616_v43 = vadd.f32 %v615_v41, %v614_v39 }
 0x34f   :  { %v625_v44 = vadd.f32 %v624_v42, %v623_v40 }
 0x350   :  { %v617_v45 = vrot.slane %v616_v43, 1 }
 0x351   :  { %v626_v46 = vrot.slane %v625_v44, 1 }
 0x352   :  { %v618_v47 = vadd.f32 %v617_v45, %v616_v43 }
 0x353   :  { %v627_v48 = vadd.f32 %v626_v46, %v625_v44 }
 0x354   :  { %v628_v49 = vmul.f32 0.03125, %v618_v47 }
 0x355   :  { %v629_v50 = vmul.f32 0.03125, %v627_v48 }
 0x356   :  { %v630_v51 = vadd.f32 1e-05, %v628_v49 }
 0x357   :  { %v631_v4 = vadd.f32 1e-05, %v629_v50 }
 0x358   :  { %825 = vrsqrt.f32 %v630_v51 }
 0x359   :  { %827 = vrsqrt.f32 %v631_v4 }
 0x362   :  { %v826_v52 = vpop.eup %825 }
 0x363   :  { %v828_v53 = vpop.eup %827  ;;  %v638_v54 = vmul.f32 %v826_v52, %v598_v17  ;;  %v640_v55 = vmul.f32 %v826_v52, %v600_v18  ;;  %v634_v56 = vmul.f32 %v826_v52, %v594_v15  ;;  %v636_v57 = vmul.f32 %v826_v52, %v596_v16 }
 0x364   :  { %v641_v58 = vmul.f32 %v828_v53, %v601_v22  ;;  %v635_v59 = vmul.f32 %v828_v53, %v595_v19  ;;  %v637_v60 = vmul.f32 %v828_v53, %v597_v20  ;;  %v639_v61 = vmul.f32 %v828_v53, %v599_v21 }
 0x365   :  { %v646_v62 = vmax.f32 %v638_v54, 0.0  ;;  %v648_v63 = vmax.f32 %v640_v55, 0.0  ;;  %v642_v0 = vmax.f32 %v634_v56, 0.0  ;;  %v644_v1 = vmax.f32 %v636_v57, 0.0 }
 0x366   :  { %v649_v2 = vmax.f32 %v641_v58, 0.0  ;;  %v643_v3 = vmax.f32 %v635_v59, 0.0  ;;  %v645_v5 = vmax.f32 %v637_v60, 0.0  ;;  %v647_v6 = vmax.f32 %v639_v61, 0.0 }
 0x367   :  { %v807_v7 = vpack.c.bf16 %v648_v63, %v646_v62  ;;  %v803_v8 = vpack.c.bf16 %v644_v1, %v642_v0 }
 0x368   :  { %v801_v9 = vpack.c.bf16 %v645_v5, %v643_v3  ;;  %v805_v10 = vpack.c.bf16 %v649_v2, %v647_v6 }
 0x36a   :  { %802 = vmatprep.subr.bf16.mxu1 %v801_v9 }
 0x36b   :  { %804 = vmatpush1.bf16.msra.mxu1 %v803_v8 }
 0x36c   :  { %806 = vmatprep.subr.bf16.mxu1 %v805_v10 }
 0x36f   :  { %808 = vmatpush1.bf16.msra.mxu1 %v807_v7 }
 0x372   :  { %784 = vmatmul.mubr.msk.f32.vlgmr.msra.gmra.mrb[12].mxu1 %vm275_vm1, %v52_v11 }
 0x445   :  { %v720_v13 = vpop.f32.mrb[12].mxu1 }
 0x446   :  { %v721_v14 = vadd.f32 %v720_v13, %v650_v12  ;;  %v722_v15 = vpop.f32.mrb[13].mxu1 }
 0x447   :  { %v723_v16 = vadd.f32 %v722_v15, %v650_v12 }
 0x448   :  { %v725_v17 = vsub.f32 0.0, %v721_v14 }
 0x449   :  { %v726_v18 = vsub.f32 0.0, %v723_v16 }
 0x44a   :  { %v727_v19 = vmul.f32 1.442695, %v725_v17 }
 0x44b   :  { %v729_v20 = vmul.f32 1.442695, %v726_v18 }
 0x44c   :  { %829 = vpow2.f32 %v727_v19 }
 0x44d   :  { %831 = vpow2.f32 %v729_v20 }
 0x456   :  { %v830_v21 = vpop.eup %829 }
 0x457   :  { %v832_v22 = vpop.eup %831  ;;  %v731_v23 = vadd.f32 1.0, %v830_v21 }
 0x458   :  { %v732_v24 = vadd.f32 1.0, %v832_v22 }
 0x459   :  { %833 = vrcp.f32 %v731_v23 }
 0x45a   :  { %835 = vrcp.f32 %v732_v24 }
 0x463   :  { %v834_v30 = vpop.eup %833 }
 0x464   :  { %v836_v32 = vpop.eup %835 }
 0x465   :  { %v737_v33 = vcombine.low %v834_v30, %v836_v32 }
 0x467   :  { %v744_v34 = vrot.slane %v737_v33, %v743_v31 }
 0x469   :  { %v751_v35 = vrot.slane %v744_v34, %v743_v31 }
 0x46b   :  { %757 = vst.msk [vmem:[#allocation3] sm:$0x3] %vm755_vm2, %v751_v35 }
 0x46c   :  { %848 = shalt.err (!%p845_p4)
}
 0x46d   :  { %s849_s29 = scalar_lea.hbm %s1034_s7, 32 }
 0x46e   :  { %p850_p5 = scmp.ne.s32.totalorder %s1034_s7, %s849_s29  ;;  %p853_p6 = scmp.lt.u32.totalorder %s849_s29, %s1034_s7 }
 0x470   :  { %p855_p7 = pnand %p853_p6, %p850_p5 }
 0x472   :  { %858 = shalt.err (!%p855_p7)
}
 0x473   :  { %767 = dma.vmem_to_hbm [thread:$0]  %s765_s6, 32, %s1034_s7, [#allocation4]  }
 0x474   :  { %859 = dma.done.wait [#allocation4], 32  }
 0x475   :  { %860 = vsyncadd [#allocation4], 4294967264 }
 0x476   :  { %771 = vsyncpa [#allocation4], 1 }

</bundles_post_ra>
